<compile_context>
chip_gen: v7x
topology: tpu7x:2x2x1
jax: 0.10.0
libtpu: 0.0.40
codegen_flags: <defaults>
</compile_context>

<pallas_src>
import jax
import jax.numpy as jnp
from jax.experimental import pallas as pl
from jax.experimental.pallas import tpu as pltpu


def _round_up(x, m):
    return (x + m - 1) // m * m


def _sublane_multiple(dtype):
    itemsize = jnp.dtype(dtype).itemsize
    return {4: 8, 2: 16, 1: 32}.get(itemsize, 8)


def _vmem_budget_bytes(headroom=8 << 20, cap=112 << 20, fallback=64 << 20):
    """Per-TensorCore VMEM budget: physical minus headroom, capped at 112 MiB."""
    try:
        phys = int(pltpu.get_tpu_info().vmem_capacity_bytes)
    except Exception:
        phys = fallback          # conservative (v7x-sized) fallback
    return int(max(min(phys - headroom, cap), 24 << 20))


def _recalibrate_kernel(x12_ref, x3_ref, w1_ref, b1_ref, w2_ref, b2_ref,
                        o_ref, acc_ref):
    k = pl.program_id(1)

    @pl.when(k == 0)
    def _():
        acc_ref[...] = jnp.zeros_like(acc_ref)

    # First linear (k-slice of the intermediate hidden dim) + ReLU.  Matmuls
    # run in the weights' dtype (bf16 by default -> native MXU passes) with
    # fp32 accumulation.  Biases are already fp32 (cast once in the wrapper).
    x3m = x3_ref[...].astype(w1_ref.dtype)
    h1 = jnp.dot(x3m, w1_ref[...], preferred_element_type=jnp.float32)
    h1 = jnp.maximum(h1 + b1_ref[...], 0.0)

    # Second linear: accumulate this k-slice's contribution in fp32.
    acc_ref[...] += jnp.dot(h1.astype(w2_ref.dtype), w2_ref[...],
                            preferred_element_type=jnp.float32)

    # Finalize on the last k-step: bias2, sigmoid gate (EUP exp), gating of x12.
    @pl.when(k == pl.num_programs(1) - 1)
    def _():
        gate = jax.nn.sigmoid(acc_ref[...] + b2_ref[...])
        o_ref[...] = (gate * x12_ref[...].astype(jnp.float32)).astype(o_ref.dtype)


def recalibrate_block_x3(x12, x3, w1, b1, w2, b2, *, row_tile=None,
                         hidden_tile=None, matmul_dtype=jnp.bfloat16):
    """x12, x3: (..., H).  w1, w2: (H, H) stored as [in, out].  b1, b2: (H,)."""
    assert x12.shape == x3.shape, "x12 and x3 must have the same shape"
    orig_shape = x3.shape
    H = orig_shape[-1]
    assert w1.shape == (H, H) and w2.shape == (H, H)
    assert b1.shape == (H,) and b2.shape == (H,)

    x12_2d = x12.reshape(-1, H)
    x3_2d = x3.reshape(-1, H)
    N = x3_2d.shape[0]

    out_dtype = x12.dtype
    mm_dtype = jnp.dtype(matmul_dtype) if matmul_dtype is not None else jnp.dtype(w1.dtype)

    Hp = _round_up(H, 128)                       # lane-dense hidden dim
    sub = max(_sublane_multiple(x12_2d.dtype), _sublane_multiple(out_dtype))

    budget = _vmem_budget_bytes()
    if row_tile is None:
        # Bigger streamed row tiles on 128-MiB parts (v5e/v6e); 256 on v7x.
        row_tile = 512 if budget >= (96 << 20) else 256
    row_tile = _round_up(max(row_tile, sub), sub)
    tm = min(row_tile, _round_up(N, sub))

    # ---- Weights / biases: pad to lane-dense Hp and cast ONCE in the wrapper.
    def pad2(a, rows, cols):
        pr, pc = rows - a.shape[0], cols - a.shape[1]
        return jnp.pad(a, ((0, pr), (0, pc))) if (pr or pc) else a

    w1_p = pad2(w1.astype(mm_dtype), Hp, Hp)
    w2_p = pad2(w2.astype(mm_dtype), Hp, Hp)
    b1_p = pad2(b1.astype(jnp.float32).reshape(1, H), 1, Hp)
    b2_p = pad2(b2.astype(jnp.float32).reshape(1, H), 1, Hp)

    # ---- Activations: never pad N; pad H only when not already 128-aligned.
    if Hp != H:
        x12_in = pad2(x12_2d, N, Hp)
        x3_in = pad2(x3_2d, N, Hp)
    else:
        x12_in, x3_in = x12_2d, x3_2d

    xsz = jnp.dtype(x12_in.dtype).itemsize
    osz = jnp.dtype(out_dtype).itemsize
    wsz = jnp.dtype(mm_dtype).itemsize

    def vmem_needed(tm_, tk_):
        act = 2 * 2 * tm_ * Hp * xsz        # x12 + x3 tiles, double-buffered
        outb = 2 * tm_ * Hp * osz           # output tile, double-buffered
        wgt = 2 * 2 * Hp * tk_ * wsz        # W1[:, k] + W2[k, :], double-buffered
        bias = 2 * (tk_ + Hp) * 4           # fp32 biases, double-buffered
        acc = tm_ * Hp * 4                  # fp32 accumulator scratch
        return act + outb + wgt + bias + acc + (2 << 20)   # compiler scratch margin

    # ---- Choose the hidden-dim tile tk (must divide Hp, multiple of 128).
    if hidden_tile is not None:
        tk = int(hidden_tile)
        assert tk % 128 == 0 and Hp % tk == 0, "hidden_tile must divide Hp and be a multiple of 128"
    else:
        cands = [Hp // n for n in range(1, Hp // 128 + 1)
                 if Hp % n == 0 and (Hp // n) % 128 == 0]   # descending, incl. Hp and 128
        tk = None
        while tk is None:
            for c in cands:
                if vmem_needed(tm, c) <= budget:
                    tk = c
                    break
            if tk is None:
                if tm <= sub:
                    tk = 128                 # give up shrinking; smallest weight slices
                else:
                    tm = max(sub, _round_up(tm // 2, sub))

    ni = pl.cdiv(N, tm)
    nk = Hp // tk

    cost = pl.CostEstimate(
        flops=4 * N * Hp * Hp + 6 * N * Hp,
        transcendentals=N * Hp,
        bytes_accessed=(2 * N * Hp * xsz + N * Hp * osz
                        + ni * 2 * Hp * Hp * wsz + 2 * Hp * 4),
    )

    out = pl.pallas_call(
        _recalibrate_kernel,
        out_shape=jax.ShapeDtypeStruct((N, Hp), out_dtype),
        grid_spec=pltpu.PrefetchScalarGridSpec(
            num_scalar_prefetch=0,
            grid=(ni, nk),
            in_specs=[
                # x12 / x3 row tiles: constant across k, so Pallas fetches them
                # once per row tile and keeps them resident over the k loop.
                pl.BlockSpec((tm, Hp), lambda i, k: (i, 0)),   # x12
                pl.BlockSpec((tm, Hp), lambda i, k: (i, 0)),   # x3
                pl.BlockSpec((Hp, tk), lambda i, k: (0, k)),   # W1[:, k-slice]
                pl.BlockSpec((1, tk), lambda i, k: (0, k)),    # b1[k-slice] (fp32)
                pl.BlockSpec((tk, Hp), lambda i, k: (k, 0)),   # W2[k-slice, :]
                pl.BlockSpec((1, Hp), lambda i, k: (0, 0)),    # b2 (fp32, resident)
            ],
            out_specs=pl.BlockSpec((tm, Hp), lambda i, k: (i, 0)),
            scratch_shapes=[pltpu.VMEM((tm, Hp), jnp.float32)],
        ),
        compiler_params=pltpu.CompilerParams(
            dimension_semantics=("parallel", "arbitrary"),
            vmem_limit_bytes=int(budget),
        ),
        cost_estimate=cost,
    )(x12_in, x3_in, w1_p, b1_p, w2_p, b2_p)

    if Hp != H:
        out = out[:, :H]
    return out.reshape(orig_shape)


def _reference(x12, x3, w1, b1, w2, b2):
    hi = jax.lax.Precision.HIGHEST
    h = jnp.maximum(jnp.dot(x3, w1, precision=hi) + b1, 0.0)
    h = jnp.dot(h, w2, precision=hi) + b2
    return jax.nn.sigmoid(h) * x12


def _make_case(batch, seq, hidden):
    ks = jax.random.split(jax.random.PRNGKey(0), 6)
    x12 = jax.random.normal(ks[0], (batch, seq, hidden), jnp.float32)
    x3 = jax.random.normal(ks[1], (batch, seq, hidden), jnp.float32)
    bound = float(hidden) ** -0.5           # nn.Linear-style init, stored as [in, out]
    w1 = jax.random.uniform(ks[2], (hidden, hidden), jnp.float32, -bound, bound)
    b1 = jax.random.uniform(ks[3], (hidden,), jnp.float32, -bound, bound)
    w2 = jax.random.uniform(ks[4], (hidden, hidden), jnp.float32, -bound, bound)
    b2 = jax.random.uniform(ks[5], (hidden,), jnp.float32, -bound, bound)
    return x12, x3, w1, b1, w2, b2


if __name__ == "__main__":
    # Case 1: module-sized shapes (batch=2, seq=8, hidden=32), default bf16 MXU path.
    x12, x3, w1, b1, w2, b2 = _make_case(2, 8, 32)
    ref = _reference(x12, x3, w1, b1, w2, b2)

    out = jax.block_until_ready(recalibrate_block_x3(x12, x3, w1, b1, w2, b2))
    assert out.shape == x12.shape and out.dtype == x12.dtype
    assert jnp.allclose(out, ref, atol=2.5e-2, rtol=2.5e-2), "bf16 path mismatch"

    # Case 1b: exact fp32 matmul path on the same inputs.
    out_f32 = jax.block_until_ready(
        recalibrate_block_x3(x12, x3, w1, b1, w2, b2, matmul_dtype=jnp.float32))
    assert jnp.allclose(out_f32, ref, atol=1e-2, rtol=1e-2), "fp32 path mismatch"

    # Case 2: lane-aligned hidden (no padding/slicing), forced hidden-dim (k)
    # tiling to exercise the accumulator path, ragged row count (N=18).
    x12, x3, w1, b1, w2, b2 = _make_case(2, 9, 256)
    ref = _reference(x12, x3, w1, b1, w2, b2)
    out = jax.block_until_ready(
        recalibrate_block_x3(x12, x3, w1, b1, w2, b2,
                             hidden_tile=128, matmul_dtype=jnp.float32))
    assert out.shape == x12.shape
    assert jnp.allclose(out, ref, atol=1e-2, rtol=1e-2), "k-tiled path mismatch"

    print("KERNEL_OK")
</pallas_src>

<mosaic_0001>
module attributes {stable_mosaic.version = 11 : i64} {
  func.func @_recalibrate_kernel(%arg0: i32, %arg1: i32, %arg2: memref<16x128xf32, #tpu.memory_space<vmem>>, %arg3: memref<16x128xf32, #tpu.memory_space<vmem>>, %arg4: memref<128x128xbf16, #tpu.memory_space<vmem>>, %arg5: memref<1x128xf32, #tpu.memory_space<vmem>>, %arg6: memref<128x128xbf16, #tpu.memory_space<vmem>>, %arg7: memref<1x128xf32, #tpu.memory_space<vmem>>, %arg8: memref<16x128xf32, #tpu.memory_space<vmem>>, %arg9: memref<16x128xf32, #tpu.memory_space<vmem>>) attributes {dimension_semantics = [#tpu.dimension_semantics<parallel>, #tpu.dimension_semantics<arbitrary>], iteration_bounds = array<i64: 1, 1>, scalar_prefetch = 0 : i64, scratch_operands = 1 : i64, tpu.core_type = #tpu.core_type<tc>, window_params = [{transform_indices = @transform_0, window_bounds = array<i64: 16, 128>}, {transform_indices = @transform_1, window_bounds = array<i64: 16, 128>}, {transform_indices = @transform_2, window_bounds = array<i64: 128, 128>}, {transform_indices = @transform_3, window_bounds = array<i64: 1, 128>}, {transform_indices = @transform_4, window_bounds = array<i64: 128, 128>}, {pipeline_mode = #tpu.pipeline_mode<synchronous>, transform_indices = @transform_5, window_bounds = array<i64: 1, 128>}, {transform_indices = @transform_6, window_bounds = array<i64: 16, 128>}]} {
    %c0_i32 = arith.constant 0 : i32
    %0 = arith.cmpi eq, %arg1, %c0_i32 : i32
    %1 = arith.extui %0 : i1 to i32
    %c0_i32_0 = arith.constant 0 : i32
    %2 = arith.cmpi ne, %1, %c0_i32_0 : i32
    scf.if %2 {
      %cst_16 = arith.constant 0.000000e+00 : f32
      %21 = vector.broadcast %cst_16 : f32 to vector<16x128xf32>
      %c0_17 = arith.constant 0 : index
      %c0_18 = arith.constant 0 : index
      %22 = vector.load %arg9[%c0_17, %c0_18] : memref<16x128xf32, #tpu.memory_space<vmem>>, vector<16x128xf32>
      tpu.vector_store %arg9[%c0_17, %c0_18], %21 {strides = array<i32>} : memref<16x128xf32, #tpu.memory_space<vmem>>, vector<16x128xf32>,
    } else {
    }
    %c0 = arith.constant 0 : index
    %c0_1 = arith.constant 0 : index
    %3 = vector.load %arg3[%c0, %c0_1] : memref<16x128xf32, #tpu.memory_space<vmem>>, vector<16x128xf32>
    %4 = arith.truncf %3 : vector<16x128xf32> to vector<16x128xbf16>
    %c0_2 = arith.constant 0 : index
    %c0_3 = arith.constant 0 : index
    %5 = vector.load %arg4[%c0_2, %c0_3] : memref<128x128xbf16, #tpu.memory_space<vmem>>, vector<128x128xbf16>
    %cst = arith.constant dense<0.000000e+00> : vector<16x128xf32>
    %6 = tpu.matmul %4, %5, %cst {dimension_numbers = #tpu.dot_dimension_numbers<[1], [0], [0], [1], [0, 0, 1, 1], [], []>} : vector<16x128xbf16>, vector<128x128xbf16>, vector<16x128xf32> -> vector<16x128xf32>
    %c0_4 = arith.constant 0 : index
    %c0_5 = arith.constant 0 : index
    %7 = vector.load %arg5[%c0_4, %c0_5] : memref<1x128xf32, #tpu.memory_space<vmem>>, vector<1x128xf32>
    %8 = vector.broadcast %7 : vector<1x128xf32> to vector<16x128xf32>
    %9 = arith.addf %6, %8 : vector<16x128xf32>
    %cst_6 = arith.constant 0.000000e+00 : f32
    %10 = vector.broadcast %cst_6 : f32 to vector<16x128xf32>
    %11 = arith.maximumf %9, %10 : vector<16x128xf32>
    %c0_7 = arith.constant 0 : index
    %c0_8 = arith.constant 0 : index
    %12 = vector.load %arg9[%c0_7, %c0_8] : memref<16x128xf32, #tpu.memory_space<vmem>>, vector<16x128xf32>
    %13 = arith.truncf %11 : vector<16x128xf32> to vector<16x128xbf16>
    %c0_9 = arith.constant 0 : index
    %c0_10 = arith.constant 0 : index
    %14 = vector.load %arg6[%c0_9, %c0_10] : memref<128x128xbf16, #tpu.memory_space<vmem>>, vector<128x128xbf16>
    %cst_11 = arith.constant dense<0.000000e+00> : vector<16x128xf32>
    %15 = tpu.matmul %13, %14, %cst_11 {dimension_numbers = #tpu.dot_dimension_numbers<[1], [0], [0], [1], [0, 0, 1, 1], [], []>} : vector<16x128xbf16>, vector<128x128xbf16>, vector<16x128xf32> -> vector<16x128xf32>
    %16 = arith.addf %12, %15 : vector<16x128xf32>
    %c0_12 = arith.constant 0 : index
    %c0_13 = arith.constant 0 : index
    %17 = vector.load %arg9[%c0_12, %c0_13] : memref<16x128xf32, #tpu.memory_space<vmem>>, vector<16x128xf32>
    tpu.vector_store %arg9[%c0_12, %c0_13], %16 {strides = array<i32>} : memref<16x128xf32, #tpu.memory_space<vmem>>, vector<16x128xf32>,
    %c0_i32_14 = arith.constant 0 : i32
    %18 = arith.cmpi eq, %arg1, %c0_i32_14 : i32
    %19 = arith.extui %18 : i1 to i32
    %c0_i32_15 = arith.constant 0 : i32
    %20 = arith.cmpi ne, %19, %c0_i32_15 : i32
    scf.if %20 {
      %c0_16 = arith.constant 0 : index
      %c0_17 = arith.constant 0 : index
      %21 = vector.load %arg9[%c0_16, %c0_17] : memref<16x128xf32, #tpu.memory_space<vmem>>, vector<16x128xf32>
      %c0_18 = arith.constant 0 : index
      %c0_19 = arith.constant 0 : index
      %22 = vector.load %arg7[%c0_18, %c0_19] : memref<1x128xf32, #tpu.memory_space<vmem>>, vector<1x128xf32>
      %23 = vector.broadcast %22 : vector<1x128xf32> to vector<16x128xf32>
      %24 = arith.addf %21, %23 : vector<16x128xf32>
      %25 = arith.negf %24 : vector<16x128xf32>
      %26 = math.exp %25 : vector<16x128xf32>
      %cst_20 = arith.constant 1.000000e+00 : f32
      %27 = vector.broadcast %cst_20 : f32 to vector<16x128xf32>
      %28 = arith.addf %27, %26 : vector<16x128xf32>
      %29 = arith.divf %27, %28 : vector<16x128xf32>
      %c0_21 = arith.constant 0 : index
      %c0_22 = arith.constant 0 : index
      %30 = vector.load %arg2[%c0_21, %c0_22] : memref<16x128xf32, #tpu.memory_space<vmem>>, vector<16x128xf32>
      %31 = arith.mulf %29, %30 : vector<16x128xf32>
      %c0_23 = arith.constant 0 : index
      %c0_24 = arith.constant 0 : index
      %32 = vector.load %arg8[%c0_23, %c0_24] : memref<16x128xf32, #tpu.memory_space<vmem>>, vector<16x128xf32>
      tpu.vector_store %arg8[%c0_23, %c0_24], %31 {strides = array<i32>} : memref<16x128xf32, #tpu.memory_space<vmem>>, vector<16x128xf32>,
    } else {
    }
    return
  }
  func.func @transform_0(%arg0: i32, %arg1: i32) -> (i32, i32) {
    %c0_i32 = arith.constant 0 : i32
    %c0_i32_0 = arith.constant 0 : i32
    return %arg0, %c0_i32 : i32, i32
  }
  func.func @transform_1(%arg0: i32, %arg1: i32) -> (i32, i32) {
    %c0_i32 = arith.constant 0 : i32
    %c0_i32_0 = arith.constant 0 : i32
    return %arg0, %c0_i32 : i32, i32
  }
  func.func @transform_2(%arg0: i32, %arg1: i32) -> (i32, i32) {
    %c0_i32 = arith.constant 0 : i32
    %c0_i32_0 = arith.constant 0 : i32
    return %c0_i32, %arg1 : i32, i32
  }
  func.func @transform_3(%arg0: i32, %arg1: i32) -> (i32, i32) {
    %c0_i32 = arith.constant 0 : i32
    %c0_i32_0 = arith.constant 0 : i32
    return %c0_i32, %arg1 : i32, i32
  }
  func.func @transform_4(%arg0: i32, %arg1: i32) -> (i32, i32) {
    %c0_i32 = arith.constant 0 : i32
    %c0_i32_0 = arith.constant 0 : i32
    return %arg1, %c0_i32 : i32, i32
  }
  func.func @transform_5(%arg0: i32, %arg1: i32) -> (i32, i32) {
    %c0_i32 = arith.constant 0 : i32
    %c0_i32_0 = arith.constant 0 : i32
    %c0_i32_1 = arith.constant 0 : i32
    return %c0_i32, %c0_i32_0 : i32, i32
  }
  func.func @transform_6(%arg0: i32, %arg1: i32) -> (i32, i32) {
    %c0_i32 = arith.constant 0 : i32
    %c0_i32_0 = arith.constant 0 : i32
    return %arg0, %c0_i32 : i32, i32
  }
}

</mosaic_0001>

<bundles_post_ra>
// kernel: tpu_custom_call.1
= control target key start
LH: loop header
LB: loop body
LE: loop exit
PB: predicated region body
PF: predicated region fallthrough
CT: control target
= control target key end

     0   :  { %11 = vsyncpa [#allocation4], 0  ;;  %s725_s0 = inlined_call_operand.hbm [shape: f32[16,128], index: 0, kind: input, shape index: {}]   ;;  %s726_s1 = inlined_call_operand.hbm [shape: f32[16,128], index: 1, kind: input, shape index: {}]   ;;  %s727_s2 = inlined_call_operand.hbm [shape: bf16[128,128], index: 2, kind: input, shape index: {}]   ;;  %s728_s3 = inlined_call_operand.vmem [shape: f32[1,128], index: 3, kind: input, shape index: {}]   ;;  %s729_s4 = inlined_call_operand.hbm [shape: bf16[128,128], index: 4, kind: input, shape index: {}]   ;;  %s730_s5 = inlined_call_operand.vmem [shape: f32[1,128], index: 5, kind: input, shape index: {}]   ;;  %s731_s6 = inlined_call_operand.hbm [shape: f32[16,128], index: 6, kind: output, shape index: {}]  }
   0x1   :  { %12 = vsyncpa [#allocation7], 0 }
   0x2   :  { %13 = vsyncpa [#allocation10], 0 }
   0x3   :  { %14 = vsyncpa [#allocation5], 0  ;;  %s597_s21 = smov [#allocation6]   ;;  %s598_s23 = smov [#allocation3]  }
   0x4   :  { %s32_s22 = sshll.u32 %s597_s21, 4  ;;  %s20_s24 = sshll.u32 %s598_s23, 4  ;;  %s33_s22 = int_to_ptr.vmem [resolvable:$true] %s32_s22  ;;  %s643_s24 = int_to_ptr.vmem [resolvable:$true] %s20_s24 }
   0x5   :  { %s479_s27 = scalar_lea.hbm %s726_s1, 256 }
   0x6   :  { %p480_p0 = scmp.ne.s32.totalorder %s726_s1, %s479_s27  ;;  %p483_p1 = scmp.lt.u32.totalorder %s479_s27, %s726_s1 }
   0x8   :  { %p485_p2 = pnand %p483_p1, %p480_p0 }
   0xa   :  { %488 = shalt.err (!%p485_p2)
}
   0xb   :  { %s489_s8 = scalar_lea.vmem %s33_s22, 256  ;;  %p494_p4 = scmp.lt.s32.totalorder %s33_s22, %s33_s22 }
   0xc   :  { %p490_p3 = scmp.ne.s32.totalorder %s33_s22, %s489_s8  ;;  %p495_p5 = scmp.lt.s32.totalorder %s489_s8, %s489_s8 }
   0xe   :  { %p496_p6 = por %p495_p5, %p494_p4 }
  0x10   :  { %p497_p7 = pnand %p496_p6, %p490_p3 }
  0x12   :  { %500 = shalt.err (!%p497_p7)
}
  0x13   :  { %s599_s9 = smov 128   ;;  %s600_s10 = smov 8  }
  0x14   :  { %38 = dma.hbm_to_vmem [thread:$0]  %s726_s1, 256, %s33_s22, [#allocation7], %s599_s9, %s599_s9, %s600_s10  }
  0x15   :  { %s501_s15 = scalar_lea.hbm %s725_s0, 256 }
  0x16   :  { %p502_p8 = scmp.ne.s32.totalorder %s725_s0, %s501_s15  ;;  %p505_p9 = scmp.lt.u32.totalorder %s501_s15, %s725_s0 }
  0x18   :  { %p507_p10 = pnand %p505_p9, %p502_p8 }
  0x1a   :  { %510 = shalt.err (!%p507_p10)
}
  0x1b   :  { %s511_s20 = scalar_lea.vmem %s643_s24, 256  ;;  %p516_p12 = scmp.lt.s32.totalorder %s643_s24, %s643_s24 }
  0x1c   :  { %p512_p11 = scmp.ne.s32.totalorder %s643_s24, %s511_s20  ;;  %p517_p13 = scmp.lt.s32.totalorder %s511_s20, %s511_s20 }
  0x1e   :  { %p518_p0 = por %p517_p13, %p516_p12 }
  0x20   :  { %p519_p1 = pnand %p518_p0, %p512_p11 }
  0x22   :  { %522 = shalt.err (!%p519_p1)
}
  0x23   :  { %26 = dma.hbm_to_vmem [thread:$0]  %s725_s0, 256, %s643_s24, [#allocation4], %s599_s9, %s599_s9, %s600_s10  }
  0x24   :  { %s601_s22 = smov [#allocation8]   ;;  %s523_s27 = scalar_lea.hbm %s727_s2, 1024 }
  0x25   :  { %s44_s23 = sshll.u32 %s601_s22, 4  ;;  %p524_p2 = scmp.ne.s32.totalorder %s727_s2, %s523_s27  ;;  %s45_s23 = int_to_ptr.vmem [resolvable:$true] %s44_s23 }
  0x26   :  { %p527_p3 = scmp.lt.u32.totalorder %s523_s27, %s727_s2 }
  0x28   :  { %p529_p4 = pnand %p527_p3, %p524_p2 }
  0x2a   :  { %532 = shalt.err (!%p529_p4)
}
  0x2b   :  { %s533_s8 = scalar_lea.vmem %s45_s23, 1024  ;;  %p538_p6 = scmp.lt.s32.totalorder %s45_s23, %s45_s23 }
  0x2c   :  { %p534_p5 = scmp.ne.s32.totalorder %s45_s23, %s533_s8  ;;  %p539_p7 = scmp.lt.s32.totalorder %s533_s8, %s533_s8 }
  0x2e   :  { %p540_p8 = por %p539_p7, %p538_p6 }
  0x30   :  { %p541_p9 = pnand %p540_p8, %p534_p5 }
  0x32   :  { %544 = shalt.err (!%p541_p9)
}
  0x33   :  { %s602_s0 = smov 64   ;;  %s603_s24 = smov 4  }
  0x34   :  { %50 = dma.hbm_to_vmem [thread:$0]  %s727_s2, 1024, %s45_s23, [#allocation7], %s602_s0, %s602_s0, %s603_s24  }
  0x35   :  { %s604_s13 = smov [#allocation9]   ;;  %s545_s17 = scalar_lea.hbm %s729_s4, 1024 }
  0x36   :  { %s58_s14 = sshll.u32 %s604_s13, 4  ;;  %p546_p10 = scmp.ne.s32.totalorder %s729_s4, %s545_s17  ;;  %s59_s14 = int_to_ptr.vmem [resolvable:$true] %s58_s14 }
  0x37   :  { %p549_p11 = scmp.lt.u32.totalorder %s545_s17, %s729_s4 }
  0x39   :  { %p551_p12 = pnand %p549_p11, %p546_p10 }
  0x3b   :  { %554 = shalt.err (!%p551_p12)
}
  0x3c   :  { %s555_s21 = scalar_lea.vmem %s59_s14, 1024  ;;  %p560_p0 = scmp.lt.s32.totalorder %s59_s14, %s59_s14 }
  0x3d   :  { %p556_p13 = scmp.ne.s32.totalorder %s59_s14, %s555_s21  ;;  %p561_p1 = scmp.lt.s32.totalorder %s555_s21, %s555_s21 }
  0x3f   :  { %p562_p2 = por %p561_p1, %p560_p0 }
  0x41   :  { %p563_p3 = pnand %p562_p2, %p556_p13 }
  0x43   :  { %566 = shalt.err (!%p563_p3)
}
  0x44   :  { %64 = dma.hbm_to_vmem [thread:$0]  %s729_s4, 1024, %s59_s14, [#allocation10], %s602_s0, %s602_s0, %s603_s24  }
  0x45   :  { %589 = dma.done.wait [#allocation4], 256  }
  0x46   :  { %590 = vsyncadd [#allocation4], 4294967040 }
  0x47   :  { %591 = dma.done.wait [#allocation7], 1280  }
  0x48   :  { %592 = vsyncadd [#allocation7], 4294966016 }
  0x49   :  { %593 = dma.done.wait [#allocation10], 1024  }
  0x4a   :  { %594 = vsyncadd [#allocation10], 4294966272  ;;  %v605_v0 = vmov 0.0   ;;  %vm606_vm0 = vmmov 0   ;;  %v455_v1 = vld [vmem:[#allocation8] sm:$0xff]   ;;  %v456_v2 = vld [vmem:[#allocation8 + $0x8] sm:$0xff]  }
  0x4b   :  { %404 = vmatprep.subr.bf16.mxu0 %v605_v0  ;;  %420 = vmatprep.mubr.msk.bf16.mxu0 %vm606_vm0, %v605_v0  ;;  %v457_v3 = vld [vmem:[#allocation8 + $0x10] sm:$0xff]   ;;  %v463_v4 = vld [vmem:[#allocation9] sm:$0xff]   ;;  %v458_v5 = vld [vmem:[#allocation8 + $0x18] sm:$0xff]  }
  0x4c   :  { %424 = vmatprep.subr.bf16.mxu1 %v605_v0  ;;  %440 = vmatprep.mubr.msk.bf16.mxu1 %vm606_vm0, %v605_v0  ;;  %v464_v6 = vld [vmem:[#allocation9 + $0x8] sm:$0xff]   ;;  %v459_v7 = vld [vmem:[#allocation8 + $0x20] sm:$0xff]   ;;  %v465_v8 = vld [vmem:[#allocation9 + $0x10] sm:$0xff]  }
  0x4d   :  { %405 = vmatpush3.bf16.msra.mxu0 %v455_v1  ;;  %425 = vmatpush3.bf16.msra.mxu1 %v463_v4  ;;  %v460_v9 = vld [vmem:[#allocation8 + $0x28] sm:$0xff]   ;;  %v466_v10 = vld [vmem:[#allocation9 + $0x18] sm:$0xff]   ;;  %v461_v11 = vld [vmem:[#allocation8 + $0x30] sm:$0xff]  }
  0x4e   :  { %406 = vmatprep.subr.bf16.mxu0 %v605_v0  ;;  %426 = vmatprep.subr.bf16.mxu1 %v605_v0  ;;  %v467_v12 = vld [vmem:[#allocation9 + $0x20] sm:$0xff]   ;;  %v462_v13 = vld [vmem:[#allocation8 + $0x38] sm:$0xff]   ;;  %v86_v14 = vld [vmem:[#allocation6] sm:$0xff] }
  0x4f   :  { %v87_v15 = vld [vmem:[#allocation6 + $0x8] sm:$0xff]  ;;  %v468_v16 = vld [vmem:[#allocation9 + $0x28] sm:$0xff]   ;;  %v469_v18 = vld [vmem:[#allocation9 + $0x30] sm:$0xff]  }
  0x50   :  { %v88_v17 = vpack.c.bf16 %v87_v15, %v86_v14  ;;  %v470_v19 = vld [vmem:[#allocation9 + $0x38] sm:$0xff]   ;;  %v366_v20 = vld [vmem:[%s728_s3] ss:$0 sm:$0xff]  ;;  %v342_v45 = vld [vmem:[#allocation3 + $0x8] sm:$0xff]  ;;  %s607_s3 = smov [#allocation11]  }
  0x51   :  { %407 = vmatpush3.bf16.msra.mxu0 %v456_v2  ;;  %427 = vmatpush3.bf16.msra.mxu1 %v464_v6  ;;  %v383_v30 = vld [vmem:[%s730_s5] ss:$0 sm:$0xff]  ;;  %s352_s5 = sshll.u32 %s607_s3, 4  ;;  %s353_s5 = int_to_ptr.vmem [resolvable:$true] %s352_s5 }
  0x52   :  { %408 = vmatprep.subr.bf16.mxu0 %v605_v0  ;;  %428 = vmatprep.subr.bf16.mxu1 %v605_v0  ;;  %v341_v43 = vld [vmem:[#allocation3] sm:$0xff]  ;;  %s567_s27 = scalar_lea.vmem %s353_s5, 256  ;;  %p572_p5 = scmp.lt.s32.totalorder %s353_s5, %s353_s5 }
  0x53   :  { %p568_p4 = scmp.ne.s32.totalorder %s353_s5, %s567_s27  ;;  %p573_p6 = scmp.lt.s32.totalorder %s567_s27, %s567_s27 }
  0x55   :  { %409 = vmatpush3.bf16.msra.mxu0 %v457_v3  ;;  %429 = vmatpush3.bf16.msra.mxu1 %v465_v8  ;;  %p574_p7 = por %p573_p6, %p572_p5 }
  0x56   :  { %410 = vmatprep.subr.bf16.mxu0 %v605_v0  ;;  %430 = vmatprep.subr.bf16.mxu1 %v605_v0 }
  0x57   :  { %p575_p8 = pnand %p574_p7, %p568_p4 }
  0x59   :  { %411 = vmatpush3.bf16.msra.mxu0 %v458_v5  ;;  %431 = vmatpush3.bf16.msra.mxu1 %v466_v10 }
  0x5a   :  { %412 = vmatprep.subr.bf16.mxu0 %v605_v0  ;;  %432 = vmatprep.subr.bf16.mxu1 %v605_v0 }
  0x5d   :  { %413 = vmatpush3.bf16.msra.mxu0 %v459_v7  ;;  %433 = vmatpush3.bf16.msra.mxu1 %v467_v12 }
  0x5e   :  { %414 = vmatprep.subr.bf16.mxu0 %v605_v0  ;;  %434 = vmatprep.subr.bf16.mxu1 %v605_v0 }
  0x61   :  { %415 = vmatpush3.bf16.msra.mxu0 %v460_v9  ;;  %435 = vmatpush3.bf16.msra.mxu1 %v468_v16 }
  0x62   :  { %416 = vmatprep.subr.bf16.mxu0 %v605_v0  ;;  %436 = vmatprep.subr.bf16.mxu1 %v605_v0 }
  0x65   :  { %417 = vmatpush3.bf16.msra.mxu0 %v461_v11  ;;  %437 = vmatpush3.bf16.msra.mxu1 %v469_v18 }
  0x66   :  { %418 = vmatprep.subr.bf16.mxu0 %v605_v0  ;;  %438 = vmatprep.subr.bf16.mxu1 %v605_v0 }
  0x69   :  { %419 = vmatpush3.bf16.msra.mxu0 %v462_v13  ;;  %439 = vmatpush3.bf16.msra.mxu1 %v470_v19 }
  0x6c   :  { %421 = vmatmul.mubr.bf16.vlgmr.msra.gmra.mrb[0].mxu0 %v88_v17 }
 0x13f   :  { %v194_v21 = vpop.f32.mrb[0].mxu0 }
 0x140   :  { %v195_v22 = vadd.f32 %v366_v20, %v194_v21  ;;  %v422_v23 = vpop.f32.mrb[1].mxu0 }
 0x141   :  { %v197_v24 = vpop.f32.mrb[2].mxu0 }
 0x142   :  { %v198_v25 = vadd.f32 %v366_v20, %v197_v24  ;;  %v423_v26 = vpop.f32.mrb[3].mxu0  ;;  %v201_v27 = vmax.f32 %v195_v22, 0.0 }
 0x144   :  { %v202_v28 = vmax.f32 %v198_v25, 0.0 }
 0x146   :  { %v205_v29 = vpack.c.bf16 %v202_v28, %v201_v27 }
 0x148   :  { %441 = vmatmul.mubr.bf16.vlgmr.msra.gmra.mrb[0].mxu1 %v205_v29 }
 0x21b   :  { %v304_v31 = vpop.f32.mrb[0].mxu1 }
 0x21c   :  { %v327_v32 = vadd.f32 %v383_v30, %v304_v31  ;;  %v442_v33 = vpop.f32.mrb[1].mxu1 }
 0x21d   :  { %v307_v34 = vpop.f32.mrb[2].mxu1 }
 0x21e   :  { %v384_v35 = vmul.f32 -1.442695, %v327_v32  ;;  %v328_v36 = vadd.f32 %v383_v30, %v307_v34  ;;  %v443_v37 = vpop.f32.mrb[3].mxu1 }
 0x220   :  { %471 = vpow2.f32 %v384_v35  ;;  %v385_v38 = vmul.f32 -1.442695, %v328_v36 }
 0x222   :  { %473 = vpow2.f32 %v385_v38 }
 0x22a   :  { %v472_v39 = vpop.eup %471 }
 0x22b   :  { %v335_v40 = vadd.f32 1.0, %v472_v39 }
 0x22c   :  { %v474_v41 = vpop.eup %473 }
 0x22d   :  { %475 = vrcp.f32 %v335_v40  ;;  %v336_v42 = vadd.f32 1.0, %v474_v41 }
 0x22f   :  { %477 = vrcp.f32 %v336_v42 }
 0x237   :  { %v476_v44 = vpop.eup %475 }
 0x238   :  { %v343_v46 = vmul.f32 %v476_v44, %v341_v43 }
 0x239   :  { %v478_v47 = vpop.eup %477 }
 0x23a   :  { %v344_v48 = vmul.f32 %v478_v47, %v342_v45  ;;  %345 = vst [vmem:[#allocation11] sm:$0xff] %v343_v46 }
 0x23c   :  { %346 = vst [vmem:[#allocation11 + $0x8] sm:$0xff] %v344_v48 }
 0x23d   :  { %578 = shalt.err (!%p575_p8)
}
 0x23e   :  { %s579_s30 = scalar_lea.hbm %s731_s6, 256 }
 0x23f   :  { %p580_p9 = scmp.ne.s32.totalorder %s731_s6, %s579_s30  ;;  %p583_p10 = scmp.lt.u32.totalorder %s579_s30, %s731_s6 }
 0x241   :  { %p585_p11 = pnand %p583_p10, %p580_p9 }
 0x243   :  { %588 = shalt.err (!%p585_p11)
}
 0x244   :  { %358 = dma.vmem_to_hbm [thread:$0]  %s353_s5, 256, %s731_s6, [#allocation5], %s599_s9, %s599_s9, %s600_s10  }
 0x245   :  { %595 = dma.done.wait [#allocation5], 256  }
 0x246   :  { %596 = vsyncadd [#allocation5], 4294967040 }
 0x247   :  { %362 = vsyncpa [#allocation4], 1 }
 0x248   :  { %363 = vsyncpa [#allocation7], 1 }
 0x249   :  { %364 = vsyncpa [#allocation10], 1 }
 0x24a   :  { %365 = vsyncpa [#allocation5], 1 }

</bundles_post_ra>
